<compile_context>
chip_gen: v7x
topology: tpu7x:2x2x1
jax: 0.10.0
libtpu: 0.0.40
codegen_flags: <defaults>
</compile_context>

<pallas_src>
import jax
import jax.numpy as jnp
from jax.experimental import pallas as pl
from jax.experimental.pallas import tpu as pltpu


def _round_up(x, m):
    return ((x + m - 1) // m) * m


def _critic_kernel(s_ref, a_ref, w1s_ref, w1a_ref, b1_ref, w2_ref, b2_ref,
                   w3_ref, b3_ref, o_ref):
    """One batch tile: relu([s,a]@W1 + b1) -> relu(@W2 + b2) -> @w3 + b3."""
    mxu_dtype = w1s_ref.dtype
    # Cast only the MXU operands (bf16-in / f32-accumulate); elementwise in f32.
    s = s_ref[...].astype(mxu_dtype)
    a = a_ref[...].astype(mxu_dtype)

    # fc1: concat(state, action) @ W1 == state @ W1[:S] + action @ W1[S:]
    h1 = (jnp.dot(s, w1s_ref[...], preferred_element_type=jnp.float32)
          + jnp.dot(a, w1a_ref[...], preferred_element_type=jnp.float32)
          + b1_ref[...])
    h1 = jnp.maximum(h1, 0.0)

    # fc2 + ReLU
    h2 = (jnp.dot(h1.astype(mxu_dtype), w2_ref[...],
                  preferred_element_type=jnp.float32)
          + b2_ref[...])
    h2 = jnp.maximum(h2, 0.0)

    # fc3 (single output feature): VPU multiply + cross-lane reduce (rides the
    # otherwise-idle XLU/VPU slots; avoids an N=1 MXU matmul + result drain).
    o_ref[...] = jnp.sum(h2 * w3_ref[...], axis=-1, keepdims=True) + b3_ref[...]
    # Note: the [TILE_B, 1] output lowers to masked stores; acceptable for this
    # tiny head — revisit (lane-dense output) only if the store slot binds.


def critic_forward(state, action, params, *, tile_b=512):
    """Pallas forward of the Critic.

    state:  [B, state_size]   float32
    action: [B, action_size]  float32
    returns [B, 1]            float32
    """
    w1s, w1a, b1, w2, b2, w3, b3 = params
    B, state_size = state.shape
    action_size = action.shape[1]
    fc1_units = w1s.shape[1]
    fc2_units = w2.shape[1]

    # Batch tile: multiple of 8 sublanes; >=512 approaches the HBM roofline,
    # but never larger than the (8-padded) batch itself.
    tile_b = max(8, min(tile_b, _round_up(B, 8)))
    b_pad = _round_up(B, tile_b)
    if b_pad != B:
        state = jnp.pad(state, ((0, b_pad - B), (0, 0)))
        action = jnp.pad(action, ((0, b_pad - B), (0, 0)))

    grid = (pl.cdiv(b_pad, tile_b),)

    def batch_spec(d):
        return pl.BlockSpec((tile_b, d), lambda i: (i, 0))

    def resident(shape):  # weights/biases: same block every step -> VMEM resident
        return pl.BlockSpec(shape, lambda i: (0, 0))

    # Explicit VMEM budget: double-buffered I/O tiles + resident weights + f32
    # intermediates, 2x headroom, clamped under v7x's 32 MiB scoped limit.
    act_bytes = state.dtype.itemsize
    w_bytes = w1s.dtype.itemsize
    need = (2 * tile_b * (state_size + action_size) * act_bytes          # x tiles
            + 2 * tile_b * 4                                             # out tiles
            + 2 * ((state_size + action_size) * fc1_units
                   + fc1_units * fc2_units) * w_bytes                    # bf16 weights
            + (fc1_units + 2 * fc2_units + 1) * 4                        # f32 biases/w3
            + 2 * tile_b * (fc1_units + fc2_units) * 4)                  # f32 activations
    vmem_limit = int(min(max(2 * need, 4 << 20), 32 << 20))

    out = pl.pallas_call(
        _critic_kernel,
        out_shape=jax.ShapeDtypeStruct((b_pad, 1), jnp.float32),
        grid=grid,
        in_specs=[
            batch_spec(state_size),
            batch_spec(action_size),
            resident((state_size, fc1_units)),
            resident((action_size, fc1_units)),
            resident((1, fc1_units)),
            resident((fc1_units, fc2_units)),
            resident((1, fc2_units)),
            resident((1, fc2_units)),
            resident((1, 1)),
        ],
        out_specs=pl.BlockSpec((tile_b, 1), lambda i: (i, 0)),
        compiler_params=pltpu.CompilerParams(
            dimension_semantics=("parallel",),  # shard batch tiles over 2 TCs (v7x)
            vmem_limit_bytes=vmem_limit,
        ),
    )(state, action, w1s, w1a, b1, w2, b2, w3, b3)

    return out[:B]


def init_critic_params(key, state_size, action_size, fc1_units=64, fc2_units=64,
                       mxu_dtype=jnp.bfloat16):
    """Init mirroring torch.nn.Linear's U(-1/sqrt(fan_in), 1/sqrt(fan_in)).

    Weights are stored transposed vs. PyTorch ([in, out]); W1 is pre-split by
    input feature (state rows / action rows) so the kernel never concatenates.
    MXU weights are stored in `mxu_dtype` (bf16 default); biases and the fc3
    row stay f32 (elementwise path, v5e-safe).
    """
    in_dim = state_size + action_size
    keys = jax.random.split(key, 6)

    def uniform(k, shape, fan_in):
        bound = 1.0 / jnp.sqrt(jnp.float32(fan_in))
        return jax.random.uniform(k, shape, jnp.float32, -bound, bound)

    w1 = uniform(keys[0], (in_dim, fc1_units), in_dim)
    w1s = w1[:state_size].astype(mxu_dtype)
    w1a = w1[state_size:].astype(mxu_dtype)
    b1 = uniform(keys[1], (1, fc1_units), in_dim)
    w2 = uniform(keys[2], (fc1_units, fc2_units), fc1_units).astype(mxu_dtype)
    b2 = uniform(keys[3], (1, fc2_units), fc1_units)
    w3 = uniform(keys[4], (fc2_units, 1), fc2_units).reshape(1, fc2_units)  # f32 row
    b3 = uniform(keys[5], (1, 1), fc2_units)
    return (w1s, w1a, b1, w2, b2, w3, b3)


def critic_reference(state, action, params):
    """Pure-JAX reference matching the kernel's precision (bf16 MXU / f32 acc)."""
    w1s, w1a, b1, w2, b2, w3, b3 = params
    cd = w1s.dtype
    h1 = jax.nn.relu(
        jnp.dot(state.astype(cd), w1s, preferred_element_type=jnp.float32)
        + jnp.dot(action.astype(cd), w1a, preferred_element_type=jnp.float32)
        + b1)
    h2 = jax.nn.relu(
        jnp.dot(h1.astype(cd), w2, preferred_element_type=jnp.float32) + b2)
    return jnp.sum(h2 * w3, axis=-1, keepdims=True) + b3


if __name__ == "__main__":
    state_size, action_size = 24, 8
    key = jax.random.PRNGKey(0)
    k_s, k_a, k_p, k_s2, k_a2 = jax.random.split(key, 5)
    params = init_critic_params(k_p, state_size, action_size)

    # Small batch: single grid step (tile clamps to the 8-padded batch).
    B = 8
    state = jax.random.normal(k_s, (B, state_size), jnp.float32)
    action = jax.random.normal(k_a, (B, action_size), jnp.float32)
    out = jax.block_until_ready(critic_forward(state, action, params))
    ref = critic_reference(state, action, params)
    assert out.shape == (B, 1), out.shape
    assert jnp.allclose(out, ref, atol=1e-4, rtol=1e-4), "mismatch (small batch)"

    # Non-multiple batch: exercises padding + multi-step grid with resident weights.
    B2 = 200
    state2 = jax.random.normal(k_s2, (B2, state_size), jnp.float32)
    action2 = jax.random.normal(k_a2, (B2, action_size), jnp.float32)
    out2 = jax.block_until_ready(critic_forward(state2, action2, params, tile_b=64))
    ref2 = critic_reference(state2, action2, params)
    assert out2.shape == (B2, 1), out2.shape
    assert jnp.allclose(out2, ref2, atol=1e-4, rtol=1e-4), "mismatch (grid batch)"

    print("KERNEL_OK")
</pallas_src>

<mosaic_0001>
module attributes {stable_mosaic.version = 11 : i64} {
  func.func @_critic_kernel(%arg0: i32, %arg1: memref<8x24xf32, #tpu.memory_space<vmem>>, %arg2: memref<8x8xf32, #tpu.memory_space<vmem>>, %arg3: memref<24x64xbf16, #tpu.memory_space<vmem>>, %arg4: memref<8x64xbf16, #tpu.memory_space<vmem>>, %arg5: memref<1x64xf32, #tpu.memory_space<vmem>>, %arg6: memref<64x64xbf16, #tpu.memory_space<vmem>>, %arg7: memref<1x64xf32, #tpu.memory_space<vmem>>, %arg8: memref<1x64xf32, #tpu.memory_space<vmem>>, %arg9: memref<1x1xf32, #tpu.memory_space<vmem>>, %arg10: memref<8x1xf32, #tpu.memory_space<vmem>>) attributes {dimension_semantics = [#tpu.dimension_semantics<parallel>], iteration_bounds = array<i64: 1>, scalar_prefetch = 0 : i64, scratch_operands = 0 : i64, tpu.core_type = #tpu.core_type<tc>, window_params = [{transform_indices = @transform_0, window_bounds = array<i64: 8, 24>}, {transform_indices = @transform_1, window_bounds = array<i64: 8, 8>}, {pipeline_mode = #tpu.pipeline_mode<synchronous>, transform_indices = @transform_2, window_bounds = array<i64: 24, 64>}, {pipeline_mode = #tpu.pipeline_mode<synchronous>, transform_indices = @transform_3, window_bounds = array<i64: 8, 64>}, {pipeline_mode = #tpu.pipeline_mode<synchronous>, transform_indices = @transform_4, window_bounds = array<i64: 1, 64>}, {pipeline_mode = #tpu.pipeline_mode<synchronous>, transform_indices = @transform_5, window_bounds = array<i64: 64, 64>}, {pipeline_mode = #tpu.pipeline_mode<synchronous>, transform_indices = @transform_6, window_bounds = array<i64: 1, 64>}, {pipeline_mode = #tpu.pipeline_mode<synchronous>, transform_indices = @transform_7, window_bounds = array<i64: 1, 64>}, {pipeline_mode = #tpu.pipeline_mode<synchronous>, transform_indices = @transform_8, window_bounds = array<i64: 1, 1>}, {transform_indices = @transform_9, window_bounds = array<i64: 8, 1>}]} {
    %c0 = arith.constant 0 : index
    %c0_0 = arith.constant 0 : index
    %0 = vector.load %arg1[%c0, %c0_0] : memref<8x24xf32, #tpu.memory_space<vmem>>, vector<8x24xf32>
    %1 = arith.truncf %0 : vector<8x24xf32> to vector<8x24xbf16>
    %c0_1 = arith.constant 0 : index
    %c0_2 = arith.constant 0 : index
    %2 = vector.load %arg2[%c0_1, %c0_2] : memref<8x8xf32, #tpu.memory_space<vmem>>, vector<8x8xf32>
    %3 = arith.truncf %2 : vector<8x8xf32> to vector<8x8xbf16>
    %c0_3 = arith.constant 0 : index
    %c0_4 = arith.constant 0 : index
    %4 = vector.load %arg3[%c0_3, %c0_4] : memref<24x64xbf16, #tpu.memory_space<vmem>>, vector<24x64xbf16>
    %cst = arith.constant dense<0.000000e+00> : vector<8x64xf32>
    %5 = tpu.matmul %1, %4, %cst {dimension_numbers = #tpu.dot_dimension_numbers<[1], [0], [0], [1], [0, 0, 1, 1], [], []>} : vector<8x24xbf16>, vector<24x64xbf16>, vector<8x64xf32> -> vector<8x64xf32>
    %c0_5 = arith.constant 0 : index
    %c0_6 = arith.constant 0 : index
    %6 = vector.load %arg4[%c0_5, %c0_6] : memref<8x64xbf16, #tpu.memory_space<vmem>>, vector<8x64xbf16>
    %cst_7 = arith.constant dense<0.000000e+00> : vector<8x64xf32>
    %7 = tpu.matmul %3, %6, %cst_7 {dimension_numbers = #tpu.dot_dimension_numbers<[1], [0], [0], [1], [0, 0, 1, 1], [], []>} : vector<8x8xbf16>, vector<8x64xbf16>, vector<8x64xf32> -> vector<8x64xf32>
    %8 = arith.addf %5, %7 : vector<8x64xf32>
    %c0_8 = arith.constant 0 : index
    %c0_9 = arith.constant 0 : index
    %9 = vector.load %arg5[%c0_8, %c0_9] : memref<1x64xf32, #tpu.memory_space<vmem>>, vector<1x64xf32>
    %10 = vector.broadcast %9 : vector<1x64xf32> to vector<8x64xf32>
    %11 = arith.addf %8, %10 : vector<8x64xf32>
    %cst_10 = arith.constant 0.000000e+00 : f32
    %12 = vector.broadcast %cst_10 : f32 to vector<8x64xf32>
    %13 = arith.maximumf %11, %12 : vector<8x64xf32>
    %14 = arith.truncf %13 : vector<8x64xf32> to vector<8x64xbf16>
    %c0_11 = arith.constant 0 : index
    %c0_12 = arith.constant 0 : index
    %15 = vector.load %arg6[%c0_11, %c0_12] : memref<64x64xbf16, #tpu.memory_space<vmem>>, vector<64x64xbf16>
    %cst_13 = arith.constant dense<0.000000e+00> : vector<8x64xf32>
    %16 = tpu.matmul %14, %15, %cst_13 {dimension_numbers = #tpu.dot_dimension_numbers<[1], [0], [0], [1], [0, 0, 1, 1], [], []>} : vector<8x64xbf16>, vector<64x64xbf16>, vector<8x64xf32> -> vector<8x64xf32>
    %c0_14 = arith.constant 0 : index
    %c0_15 = arith.constant 0 : index
    %17 = vector.load %arg7[%c0_14, %c0_15] : memref<1x64xf32, #tpu.memory_space<vmem>>, vector<1x64xf32>
    %18 = vector.broadcast %17 : vector<1x64xf32> to vector<8x64xf32>
    %19 = arith.addf %16, %18 : vector<8x64xf32>
    %cst_16 = arith.constant 0.000000e+00 : f32
    %20 = vector.broadcast %cst_16 : f32 to vector<8x64xf32>
    %21 = arith.maximumf %19, %20 : vector<8x64xf32>
    %c0_17 = arith.constant 0 : index
    %c0_18 = arith.constant 0 : index
    %22 = vector.load %arg8[%c0_17, %c0_18] : memref<1x64xf32, #tpu.memory_space<vmem>>, vector<1x64xf32>
    %23 = vector.broadcast %22 : vector<1x64xf32> to vector<8x64xf32>
    %24 = arith.mulf %21, %23 : vector<8x64xf32>
    %cst_19 = arith.constant dense<0.000000e+00> : vector<8xf32>
    %25 = vector.multi_reduction <add>, %24, %cst_19 [1] : vector<8x64xf32> to vector<8xf32>
    %26 = vector.shape_cast %25 : vector<8xf32> to vector<8x1xf32>
    %c0_20 = arith.constant 0 : index
    %c0_21 = arith.constant 0 : index
    %27 = vector.load %arg9[%c0_20, %c0_21] : memref<1x1xf32, #tpu.memory_space<vmem>>, vector<1x1xf32>
    %28 = vector.broadcast %27 : vector<1x1xf32> to vector<8x1xf32>
    %29 = arith.addf %26, %28 : vector<8x1xf32>
    %c0_22 = arith.constant 0 : index
    %c0_23 = arith.constant 0 : index
    %30 = vector.load %arg10[%c0_22, %c0_23] : memref<8x1xf32, #tpu.memory_space<vmem>>, vector<8x1xf32>
    tpu.vector_store %arg10[%c0_22, %c0_23], %29 {strides = array<i32>} : memref<8x1xf32, #tpu.memory_space<vmem>>, vector<8x1xf32>,
    return
  }
  func.func @transform_0(%arg0: i32) -> (i32, i32) {
    %c0_i32 = arith.constant 0 : i32
    %c0_i32_0 = arith.constant 0 : i32
    return %arg0, %c0_i32 : i32, i32
  }
  func.func @transform_1(%arg0: i32) -> (i32, i32) {
    %c0_i32 = arith.constant 0 : i32
    %c0_i32_0 = arith.constant 0 : i32
    return %arg0, %c0_i32 : i32, i32
  }
  func.func @transform_2(%arg0: i32) -> (i32, i32) {
    %c0_i32 = arith.constant 0 : i32
    %c0_i32_0 = arith.constant 0 : i32
    %c0_i32_1 = arith.constant 0 : i32
    return %c0_i32, %c0_i32_0 : i32, i32
  }
  func.func @transform_3(%arg0: i32) -> (i32, i32) {
    %c0_i32 = arith.constant 0 : i32
    %c0_i32_0 = arith.constant 0 : i32
    %c0_i32_1 = arith.constant 0 : i32
    return %c0_i32, %c0_i32_0 : i32, i32
  }
  func.func @transform_4(%arg0: i32) -> (i32, i32) {
    %c0_i32 = arith.constant 0 : i32
    %c0_i32_0 = arith.constant 0 : i32
    %c0_i32_1 = arith.constant 0 : i32
    return %c0_i32, %c0_i32_0 : i32, i32
  }
  func.func @transform_5(%arg0: i32) -> (i32, i32) {
    %c0_i32 = arith.constant 0 : i32
    %c0_i32_0 = arith.constant 0 : i32
    %c0_i32_1 = arith.constant 0 : i32
    return %c0_i32, %c0_i32_0 : i32, i32
  }
  func.func @transform_6(%arg0: i32) -> (i32, i32) {
    %c0_i32 = arith.constant 0 : i32
    %c0_i32_0 = arith.constant 0 : i32
    %c0_i32_1 = arith.constant 0 : i32
    return %c0_i32, %c0_i32_0 : i32, i32
  }
  func.func @transform_7(%arg0: i32) -> (i32, i32) {
    %c0_i32 = arith.constant 0 : i32
    %c0_i32_0 = arith.constant 0 : i32
    %c0_i32_1 = arith.constant 0 : i32
    return %c0_i32, %c0_i32_0 : i32, i32
  }
  func.func @transform_8(%arg0: i32) -> (i32, i32) {
    %c0_i32 = arith.constant 0 : i32
    %c0_i32_0 = arith.constant 0 : i32
    %c0_i32_1 = arith.constant 0 : i32
    return %c0_i32, %c0_i32_0 : i32, i32
  }
  func.func @transform_9(%arg0: i32) -> (i32, i32) {
    %c0_i32 = arith.constant 0 : i32
    %c0_i32_0 = arith.constant 0 : i32
    return %arg0, %c0_i32 : i32, i32
  }
}

</mosaic_0001>

<bundles_post_ra>
// kernel: tpu_custom_call.1
= control target key start
LH: loop header
LB: loop body
LE: loop exit
PB: predicated region body
PF: predicated region fallthrough
CT: control target
= control target key end

     0   :  { %s604_s0 = inlined_call_operand.hbm [shape: f32[8,24], index: 0, kind: input, shape index: {}]   ;;  %s605_s1 = inlined_call_operand.hbm [shape: f32[8,8], index: 1, kind: input, shape index: {}]   ;;  %s606_s2 = inlined_call_operand.hbm [shape: bf16[24,64], index: 2, kind: input, shape index: {}]   ;;  %s607_s3 = inlined_call_operand.vmem [shape: bf16[8,64], index: 3, kind: input, shape index: {}]   ;;  %s608_s4 = inlined_call_operand.vmem [shape: f32[1,64], index: 4, kind: input, shape index: {}]   ;;  %s609_s5 = inlined_call_operand.hbm [shape: bf16[64,64], index: 5, kind: input, shape index: {}]   ;;  %s610_s6 = inlined_call_operand.vmem [shape: f32[1,64], index: 6, kind: input, shape index: {}]   ;;  %s611_s7 = inlined_call_operand.vmem [shape: f32[1,64], index: 7, kind: input, shape index: {}]   ;;  %s612_s8 = inlined_call_operand.<no memory space> [shape: f32[1,1], index: 8, kind: input, shape index: {}]   ;;  %s613_s9 = inlined_call_operand.vmem [shape: f32[8,1], index: 9, kind: output, shape index: {}]  }
   0x1   :  { %v14_v0 = vstv %s612_s8 }
   0x2   :  { %15 = vst [vmem:[#allocation2] sm:$0x1] %v14_v0 }
   0x3   :  { %16 = vsyncpa [#allocation4], 0 }
   0x4   :  { %17 = vsyncpa [#allocation6], 0 }
   0x5   :  { %18 = vsyncpa [#allocation9], 0  ;;  %s477_s11 = smov [#allocation5]   ;;  %s478_s13 = smov [#allocation3]  }
   0x6   :  { %s35_s12 = sshll.u32 %s477_s11, 4  ;;  %s25_s14 = sshll.u32 %s478_s13, 4  ;;  %s36_s12 = int_to_ptr.vmem [resolvable:$true] %s35_s12  ;;  %s26_s14 = int_to_ptr.vmem [resolvable:$true] %s25_s14 }
   0x7   :  { %s383_s17 = scalar_lea.hbm %s605_s1, 128 }
   0x8   :  { %p384_p0 = scmp.ne.s32.totalorder %s605_s1, %s383_s17  ;;  %p387_p1 = scmp.lt.u32.totalorder %s383_s17, %s605_s1 }
   0xa   :  { %p389_p2 = pnand %p387_p1, %p384_p0 }
   0xc   :  { %392 = shalt.err (!%p389_p2)
}
   0xd   :  { %s393_s21 = scalar_lea.vmem %s36_s12, 128  ;;  %p398_p4 = scmp.lt.s32.totalorder %s36_s12, %s36_s12 }
   0xe   :  { %p394_p3 = scmp.ne.s32.totalorder %s36_s12, %s393_s21  ;;  %p399_p5 = scmp.lt.s32.totalorder %s393_s21, %s393_s21 }
  0x10   :  { %p400_p6 = por %p399_p5, %p398_p4 }
  0x12   :  { %p401_p7 = pnand %p400_p6, %p394_p3 }
  0x14   :  { %404 = shalt.err (!%p401_p7)
}
  0x15   :  { %38 = dma.hbm_to_vmem [thread:$0]  %s605_s1, 128, %s36_s12, [#allocation6]  }
  0x16   :  { %s405_s26 = scalar_lea.hbm %s604_s0, 128 }
  0x17   :  { %p406_p8 = scmp.ne.s32.totalorder %s604_s0, %s405_s26  ;;  %p409_p9 = scmp.lt.u32.totalorder %s405_s26, %s604_s0 }
  0x19   :  { %p411_p10 = pnand %p409_p9, %p406_p8 }
  0x1b   :  { %414 = shalt.err (!%p411_p10)
}
  0x1c   :  { %s415_s10 = scalar_lea.vmem %s26_s14, 128  ;;  %p420_p12 = scmp.lt.s32.totalorder %s26_s14, %s26_s14 }
  0x1d   :  { %p416_p11 = scmp.ne.s32.totalorder %s26_s14, %s415_s10  ;;  %p421_p13 = scmp.lt.s32.totalorder %s415_s10, %s415_s10 }
  0x1f   :  { %p422_p0 = por %p421_p13, %p420_p12 }
  0x21   :  { %p423_p1 = pnand %p422_p0, %p416_p11 }
  0x23   :  { %426 = shalt.err (!%p423_p1)
}
  0x24   :  { %28 = dma.hbm_to_vmem [thread:$0]  %s604_s0, 128, %s26_s14, [#allocation4]  }
  0x25   :  { %s479_s12 = smov [#allocation7]   ;;  %s427_s17 = scalar_lea.hbm %s606_s2, 192 }
  0x26   :  { %s44_s13 = sshll.u32 %s479_s12, 4  ;;  %p428_p2 = scmp.ne.s32.totalorder %s606_s2, %s427_s17  ;;  %s45_s13 = int_to_ptr.vmem [resolvable:$true] %s44_s13 }
  0x27   :  { %p431_p3 = scmp.lt.u32.totalorder %s427_s17, %s606_s2 }
  0x29   :  { %p433_p4 = pnand %p431_p3, %p428_p2 }
  0x2b   :  { %436 = shalt.err (!%p433_p4)
}
  0x2c   :  { %s437_s21 = scalar_lea.vmem %s45_s13, 192  ;;  %p442_p6 = scmp.lt.s32.totalorder %s45_s13, %s45_s13 }
  0x2d   :  { %p438_p5 = scmp.ne.s32.totalorder %s45_s13, %s437_s21  ;;  %p443_p7 = scmp.lt.s32.totalorder %s437_s21, %s437_s21 }
  0x2f   :  { %p444_p8 = por %p443_p7, %p442_p6 }
  0x31   :  { %p445_p9 = pnand %p444_p8, %p438_p5 }
  0x33   :  { %448 = shalt.err (!%p445_p9)
}
  0x34   :  { %s480_s0 = smov 64   ;;  %s481_s14 = smov 4  }
  0x35   :  { %50 = dma.hbm_to_vmem [thread:$0]  %s606_s2, 192, %s45_s13, [#allocation6], %s480_s0, %s480_s0, %s481_s14  }
  0x36   :  { %s482_s24 = smov [#allocation8]   ;;  %s449_s28 = scalar_lea.hbm %s609_s5, 512 }
  0x37   :  { %s60_s25 = sshll.u32 %s482_s24, 4  ;;  %p450_p10 = scmp.ne.s32.totalorder %s609_s5, %s449_s28  ;;  %s61_s25 = int_to_ptr.vmem [resolvable:$true] %s60_s25 }
  0x38   :  { %p453_p11 = scmp.lt.u32.totalorder %s449_s28, %s609_s5 }
  0x3a   :  { %p455_p12 = pnand %p453_p11, %p450_p10 }
  0x3c   :  { %458 = shalt.err (!%p455_p12)
}
  0x3d   :  { %s459_s11 = scalar_lea.vmem %s61_s25, 512  ;;  %p464_p0 = scmp.lt.s32.totalorder %s61_s25, %s61_s25 }
  0x3e   :  { %p460_p13 = scmp.ne.s32.totalorder %s61_s25, %s459_s11  ;;  %p465_p1 = scmp.lt.s32.totalorder %s459_s11, %s459_s11 }
  0x40   :  { %p466_p2 = por %p465_p1, %p464_p0 }
  0x42   :  { %p467_p3 = pnand %p466_p2, %p460_p13 }
  0x44   :  { %470 = shalt.err (!%p467_p3)
}
  0x45   :  { %66 = dma.hbm_to_vmem [thread:$0]  %s609_s5, 512, %s61_s25, [#allocation9], %s480_s0, %s480_s0, %s481_s14  }
  0x46   :  { %471 = dma.done.wait [#allocation4], 128  }
  0x47   :  { %472 = vsyncadd [#allocation4], 4294967168 }
  0x48   :  { %473 = dma.done.wait [#allocation6], 320  }
  0x49   :  { %474 = vsyncadd [#allocation6], 4294966976 }
  0x4a   :  { %475 = dma.done.wait [#allocation9], 512  }
  0x4b   :  { %476 = vsyncadd [#allocation9], 4294966784  ;;  %v483_v1 = vmov 0.0   ;;  %vm484_vm0 = vmmov 0   ;;  %vm98_vm1 = vcmask 1043456   ;;  %v88_v4 = vld [vmem:[#allocation5] sm:$0xff] }
  0x4c   :  { %343 = vmatprep.subr.bf16.mxu1 %v483_v1  ;;  %345 = vmatprep.mubr.msk.bf16.mxu1 %vm484_vm0, %v483_v1  ;;  %v93_v2 = vld [vmem:[%s607_s3] sm:$0xf]  ;;  %v377_v5 = vld [vmem:[#allocation7 + $0x8] ss:$0 sps:$4 sm:$0xff]   ;;  %v89_v6 = vpack.c.bf16 %v88_v4, %v88_v4  ;;  %vm94_vm2 = vcmask 64512   ;;  %v378_v7 = vld [vmem:[#allocation7] sm:$0xff]  }
  0x4d   :  { %357 = vmatprep.subr.bf16.mxu0 %v483_v1  ;;  %365 = vmatprep.mubr.msk.bf16.mxu0 %vm484_vm0, %v483_v1  ;;  %v100_v3 = vsel %vm98_vm1, %v93_v2, 0  ;;  %v86_v8 = vld [vmem:[#allocation3] sm:$0xff]  ;;  %v156_v9 = vsel %vm98_vm1, %v377_v5, 0  ;;  %vm151_vm3 = vcmask 195584   ;;  %v381_v13 = vld [vmem:[#allocation8 + $0x10] sm:$0xff]   ;;  %v382_v14 = vld [vmem:[#allocation8 + $0x18] sm:$0xff]  }
  0x4e   :  { %344 = vmatpush3.bf16.msra.mxu1 %v100_v3  ;;  %v87_v10 = vpack.c.bf16 %v86_v8, %v86_v8  ;;  %v379_v11 = vld [vmem:[#allocation8] sm:$0xff]   ;;  %v380_v12 = vld [vmem:[#allocation8 + $0x8] sm:$0xff]   ;;  %vm247_vm4 = vcmask 523264   ;;  %vm311_vm5 = vcmask 7168  }
  0x4f   :  { %349 = vmatprep.subr.bf16.mxu1 %v483_v1  ;;  %358 = vmatpush3.bf16.msra.mxu0 %v379_v11  ;;  %v324_v20 = vld [vmem:[%s608_s4] ss:$0 sm:$0xff] }
  0x50   :  { %359 = vmatprep.subr.bf16.mxu0 %v483_v1  ;;  %v325_v28 = vld [vmem:[%s610_s6] ss:$0 sm:$0xff] }
  0x51   :  { %346 = vmatmul.mubr.msk.bf16.vlgmr.msra.gmra.mrb[0].mxu1 %vm94_vm2, %v89_v6  ;;  %v331_v33 = vld [vmem:[%s611_s7] ss:$0 sm:$0xff] }
  0x52   :  { %350 = vmatpush3.bf16.msra.mxu1 %v378_v7  ;;  %353 = vmatprep.mubr.msk.bf16.mxu1 %vm484_vm0, %v483_v1  ;;  %v332_v38 = vld [vmem:[#allocation2] ss:$0 sm:$0xff] }
  0x53   :  { %351 = vmatprep.subr.bf16.mxu1 %v483_v1  ;;  %360 = vmatpush3.bf16.msra.mxu0 %v380_v12 }
  0x54   :  { %361 = vmatprep.subr.bf16.mxu0 %v483_v1 }
  0x56   :  { %352 = vmatpush3.bf16.msra.mxu1 %v156_v9 }
  0x57   :  { %362 = vmatpush3.bf16.msra.mxu0 %v381_v13 }
  0x58   :  { %363 = vmatprep.subr.bf16.mxu0 %v483_v1 }
  0x59   :  { %354 = vmatmul.mubr.msk.bf16.vlgmr.msra.gmra.mrb[4].mxu1 %vm151_vm3, %v87_v10 }
  0x5b   :  { %364 = vmatpush3.bf16.msra.mxu0 %v382_v14 }
 0x124   :  { %v136_v15 = vpop.f32.mrb[0].mxu1 }
 0x125   :  { %v347_v16 = vpop.f32.mrb[1].mxu1 }
 0x126   :  { %v139_v17 = vpop.f32.mrb[2].mxu1 }
 0x127   :  { %v348_v18 = vpop.f32.mrb[3].mxu1 }
 0x12c   :  { %v192_v19 = vpop.f32.mrb[4].mxu1 }
 0x12d   :  { %v193_v21 = vadd.f32 %v192_v19, %v136_v15  ;;  %v355_v22 = vpop.f32.mrb[5].mxu1 }
 0x12e   :  { %v195_v23 = vpop.f32.mrb[6].mxu1 }
 0x12f   :  { %v205_v24 = vadd.f32 %v324_v20, %v193_v21  ;;  %v356_v25 = vpop.f32.mrb[7].mxu1 }
 0x131   :  { %v206_v26 = vmax.f32 %v205_v24, 0.0 }
 0x133   :  { %v207_v27 = vpack.c.bf16 %v206_v26, %v206_v26 }
 0x135   :  { %366 = vmatmul.mubr.msk.bf16.vlgmr.msra.gmra.mrb[0].mxu0 %vm247_vm4, %v207_v27 }
 0x208   :  { %v285_v29 = vpop.f32.mrb[0].mxu0 }
 0x209   :  { %v286_v30 = vadd.f32 %v325_v28, %v285_v29  ;;  %v367_v31 = vpop.f32.mrb[1].mxu0 }
 0x20a   :  { %v288_v32 = vpop.f32.mrb[2].mxu0 }
 0x20b   :  { %v291_v34 = vmax.f32 %v286_v30, 0.0  ;;  %v368_v35 = vpop.f32.mrb[3].mxu0 }
 0x20d   :  { %v299_v36 = vmul.f32 %v331_v33, %v291_v34 }
 0x20f   :  { %v300_v37 = vsel %vm247_vm4, %v299_v36, 0.0 }
 0x210   :  { %301 = vadd.xlane.f32.xlu0 %v300_v37 }
 0x29d   :  { %v302_v39 = vpop.xlane.xlu0 %301 }
 0x29e   :  { %v310_v40 = vadd.f32 %v332_v38, %v302_v39 }
 0x2a0   :  { %312 = vst.msk [vmem:[%s613_s9] sm:$0xff] %vm311_vm5, %v310_v40 }
 0x2a1   :  { %317 = vsyncpa [#allocation4], 1 }
 0x2a2   :  { %318 = vsyncpa [#allocation6], 1 }
 0x2a3   :  { %319 = vsyncpa [#allocation9], 1 }

</bundles_post_ra>
